<compile_context>
chip_gen: v6e
topology: v6e:2x2x1
jax: 0.10.0
libtpu: 0.0.40
codegen_flags: <defaults>
</compile_context>

<pallas_src>
import functools

import jax
import jax.numpy as jnp
from jax import lax
from jax.experimental import pallas as pl
from jax.experimental.pallas import tpu as pltpu


# --------------------------------------------------------------------------
# fused LayerNorm(4C) + Linear(4C -> 2C, no bias) kernel
#   r0_ref   : (TH, WO, 2C)   rows with dr=0 (columns = [dc=0 chans | dc=1 chans])
#   r1_ref   : (TH, WO, 2C)   rows with dr=1
#   w_ref    : (2, 2C, Cout)  gamma-folded W^T, regrouped per dr-half
#   bias_ref : (1, Cout)      beta @ W^T
#   o_ref    : (TH, WO, Cout)
# --------------------------------------------------------------------------
def _patch_merging_kernel(r0_ref, r1_ref, w_ref, bias_ref, o_ref, *, eps, n_feat):
    TH, WO, C2 = r0_ref.shape
    C_out = o_ref.shape[-1]
    M = TH * WO

    r0 = r0_ref[...].astype(jnp.float32).reshape(M, C2)
    r1 = r1_ref[...].astype(jnp.float32).reshape(M, C2)

    inv_n = 1.0 / float(n_feat)
    # LayerNorm statistics over the full 4C feature (split across r0/r1 halves).
    mean = (jnp.sum(r0, axis=-1, keepdims=True) +
            jnp.sum(r1, axis=-1, keepdims=True)) * inv_n
    d0 = r0 - mean
    d1 = r1 - mean
    var = (jnp.sum(d0 * d0, axis=-1, keepdims=True) +
           jnp.sum(d1 * d1, axis=-1, keepdims=True)) * inv_n
    inv = lax.rsqrt(var + eps)            # EUP, off the VALU critical path

    ln0 = d0 * inv                        # gamma folded into w_ref, beta into bias_ref
    ln1 = d1 * inv

    # 4C -> 2C reduction as two half-K MXU matmuls with f32 accumulation.
    acc = jnp.dot(ln0, w_ref[0], preferred_element_type=jnp.float32)
    acc = acc + jnp.dot(ln1, w_ref[1], preferred_element_type=jnp.float32)
    acc = acc + bias_ref[...]             # (1, Cout) broadcast over M

    o_ref[...] = acc.reshape(TH, WO, C_out).astype(o_ref.dtype)


# --------------------------------------------------------------------------
# wrapper
# --------------------------------------------------------------------------
def patch_merging2d(x, gamma, beta, w_red, *, eps=1e-5):
    """x: (B, H, W, C); gamma/beta: (4C,); w_red: (2C, 4C) torch Linear weight."""
    B, H, W, C = x.shape
    HO, WO = H // 2, W // 2
    # torch SHAPE_FIX path: odd H/W -> crop (cropping before splitting is identical).
    if (H % 2 != 0) or (W % 2 != 0):
        x = x[:, :2 * HO, :2 * WO, :]
    C2 = 2 * C
    C_out = w_red.shape[0]

    # Free (zero-copy) view: (b, ho, dr, wo, dc*C)
    x5 = x.reshape(B, HO, 2, WO, C2)

    # Host-side parameter prep (done once, negligible cost):
    #   - fold gamma into W^T:  y = ((x-mu)*inv) @ (gamma[:,None]*W^T) + beta@W^T
    #   - regroup from the torch concat order [(0,0),(1,0),(0,1),(1,1)] into the
    #     natural per-dr-half order [dc=0 | dc=1] seen by the kernel.
    wT = jnp.transpose(w_red).astype(jnp.float32)            # (4C, Cout)
    w_folded = gamma.astype(jnp.float32)[:, None] * wT        # (4C, Cout)
    bias_out = (beta.astype(jnp.float32) @ wT)[None, :]       # (1, Cout)

    def regroup_rows(v):  # leading axis is 4C -> (2, 2C, ...)
        return jnp.stack(
            [jnp.concatenate([v[0 * C:1 * C], v[2 * C:3 * C]], axis=0),
             jnp.concatenate([v[1 * C:2 * C], v[3 * C:4 * C]], axis=0)], axis=0)

    wt = regroup_rows(w_folded)                               # (2, 2C, Cout)

    # Tile height over HO: largest divisor keeping an input block <= ~2 MiB
    # (two inputs + one output, double-buffered, stays well inside the default
    #  scoped-VMEM budget on v5e/v6e and v7x).
    bytes_per_ho_row = max(1, WO * C2 * x.dtype.itemsize)
    max_rows = max(1, (2 << 20) // bytes_per_ho_row)
    TH = 1
    for cand in range(1, HO + 1):
        if HO % cand == 0 and cand <= max_rows:
            TH = cand

    grid = (B, HO // TH)
    kernel = functools.partial(_patch_merging_kernel, eps=eps, n_feat=4 * C)

    return pl.pallas_call(
        kernel,
        out_shape=jax.ShapeDtypeStruct((B, HO, WO, C_out), x.dtype),
        grid=grid,
        in_specs=[
            # dr = 0 rows of each output tile
            pl.BlockSpec((None, TH, None, WO, C2), lambda b, i: (b, i, 0, 0, 0)),
            # dr = 1 rows of the same tile (same array, different index_map)
            pl.BlockSpec((None, TH, None, WO, C2), lambda b, i: (b, i, 1, 0, 0)),
            pl.BlockSpec((2, C2, C_out), lambda b, i: (0, 0, 0)),
            pl.BlockSpec((1, C_out), lambda b, i: (0, 0)),
        ],
        out_specs=pl.BlockSpec((None, TH, WO, C_out), lambda b, i: (b, i, 0, 0)),
        compiler_params=pltpu.CompilerParams(
            dimension_semantics=("parallel", "parallel")),
    )(x5, x5, wt, bias_out)


# --------------------------------------------------------------------------
# pure-JAX reference (literal transcription of the torch forward)
# --------------------------------------------------------------------------
def patch_merging2d_ref(x, gamma, beta, w_red, *, eps=1e-5):
    B, H, W, C = x.shape
    HO, WO = H // 2, W // 2
    x = x[:, :2 * HO, :2 * WO, :]
    x0 = x[:, 0::2, 0::2, :]
    x1 = x[:, 1::2, 0::2, :]
    x2 = x[:, 0::2, 1::2, :]
    x3 = x[:, 1::2, 1::2, :]
    xc = jnp.concatenate([x0, x1, x2, x3], axis=-1)          # (B, HO, WO, 4C)
    mu = jnp.mean(xc, axis=-1, keepdims=True)
    var = jnp.mean((xc - mu) ** 2, axis=-1, keepdims=True)
    xn = (xc - mu) / jnp.sqrt(var + eps) * gamma + beta
    return jnp.einsum('bhwk,nk->bhwn', xn, w_red)


if __name__ == "__main__":
    key = jax.random.PRNGKey(0)
    kx, kg, kb, kw = jax.random.split(key, 4)

    # small shapes consistent with the module: (B, H, W, C) with even H, W
    B, H, W, C = 2, 16, 16, 32
    x = jax.random.normal(kx, (B, H, W, C), jnp.float32)
    gamma = 1.0 + 0.1 * jax.random.normal(kg, (4 * C,), jnp.float32)
    beta = 0.1 * jax.random.normal(kb, (4 * C,), jnp.float32)
    w_red = 0.1 * jax.random.normal(kw, (2 * C, 4 * C), jnp.float32)

    fwd = jax.jit(patch_merging2d)
    out = fwd(x, gamma, beta, w_red)
    jax.block_until_ready(out)

    ref = jax.jit(patch_merging2d_ref)(x, gamma, beta, w_red)
    err = float(jnp.max(jnp.abs(out - ref)))
    assert out.shape == (B, H // 2, W // 2, 2 * C), f"bad shape {out.shape}"
    assert err < 1e-3, f"mismatch: max|diff|={err}"

    print("KERNEL_OK")
</pallas_src>

<mosaic_0001>
module attributes {stable_mosaic.version = 11 : i64} {
  func.func @_patch_merging_kernel(%arg0: i32, %arg1: i32, %arg2: memref<1x8x1x8x64xf32, #tpu.memory_space<vmem>>, %arg3: memref<1x8x1x8x64xf32, #tpu.memory_space<vmem>>, %arg4: memref<2x64x64xf32, #tpu.memory_space<vmem>>, %arg5: memref<1x64xf32, #tpu.memory_space<vmem>>, %arg6: memref<1x8x8x64xf32, #tpu.memory_space<vmem>>) attributes {dimension_semantics = [#tpu.dimension_semantics<parallel>, #tpu.dimension_semantics<parallel>], iteration_bounds = array<i64: 2, 1>, scalar_prefetch = 0 : i64, scratch_operands = 0 : i64, tpu.core_type = #tpu.core_type<tc>, window_params = [{transform_indices = @transform_0, window_bounds = array<i64: 1, 8, 1, 8, 64>}, {transform_indices = @transform_1, window_bounds = array<i64: 1, 8, 1, 8, 64>}, {pipeline_mode = #tpu.pipeline_mode<synchronous>, transform_indices = @transform_2, window_bounds = array<i64: 2, 64, 64>}, {pipeline_mode = #tpu.pipeline_mode<synchronous>, transform_indices = @transform_3, window_bounds = array<i64: 1, 64>}, {transform_indices = @transform_4, window_bounds = array<i64: 1, 8, 8, 64>}]} {
    %c0 = arith.constant 0 : index
    %c0_0 = arith.constant 0 : index
    %c0_1 = arith.constant 0 : index
    %c0_2 = arith.constant 0 : index
    %c0_3 = arith.constant 0 : index
    %0 = vector.load %arg2[%c0, %c0_0, %c0_1, %c0_2, %c0_3] : memref<1x8x1x8x64xf32, #tpu.memory_space<vmem>>, vector<1x8x1x8x64xf32>
    %1 = vector.shape_cast %0 : vector<1x8x1x8x64xf32> to vector<8x8x64xf32>
    %2 = vector.shape_cast %1 : vector<8x8x64xf32> to vector<64x64xf32>
    %c0_4 = arith.constant 0 : index
    %c0_5 = arith.constant 0 : index
    %c0_6 = arith.constant 0 : index
    %c0_7 = arith.constant 0 : index
    %c0_8 = arith.constant 0 : index
    %3 = vector.load %arg3[%c0_4, %c0_5, %c0_6, %c0_7, %c0_8] : memref<1x8x1x8x64xf32, #tpu.memory_space<vmem>>, vector<1x8x1x8x64xf32>
    %4 = vector.shape_cast %3 : vector<1x8x1x8x64xf32> to vector<8x8x64xf32>
    %5 = vector.shape_cast %4 : vector<8x8x64xf32> to vector<64x64xf32>
    %cst = arith.constant dense<0.000000e+00> : vector<64xf32>
    %6 = vector.multi_reduction <add>, %2, %cst [1] : vector<64x64xf32> to vector<64xf32>
    %7 = vector.shape_cast %6 : vector<64xf32> to vector<64x1xf32>
    %cst_9 = arith.constant dense<0.000000e+00> : vector<64xf32>
    %8 = vector.multi_reduction <add>, %5, %cst_9 [1] : vector<64x64xf32> to vector<64xf32>
    %9 = vector.shape_cast %8 : vector<64xf32> to vector<64x1xf32>
    %10 = arith.addf %7, %9 : vector<64x1xf32>
    %cst_10 = arith.constant 7.812500e-03 : f32
    %11 = vector.broadcast %cst_10 : f32 to vector<64x1xf32>
    %12 = arith.mulf %10, %11 : vector<64x1xf32>
    %13 = vector.broadcast %12 : vector<64x1xf32> to vector<64x64xf32>
    %14 = arith.subf %2, %13 : vector<64x64xf32>
    %15 = vector.broadcast %12 : vector<64x1xf32> to vector<64x64xf32>
    %16 = arith.subf %5, %15 : vector<64x64xf32>
    %17 = arith.mulf %14, %14 : vector<64x64xf32>
    %cst_11 = arith.constant dense<0.000000e+00> : vector<64xf32>
    %18 = vector.multi_reduction <add>, %17, %cst_11 [1] : vector<64x64xf32> to vector<64xf32>
    %19 = vector.shape_cast %18 : vector<64xf32> to vector<64x1xf32>
    %20 = arith.mulf %16, %16 : vector<64x64xf32>
    %cst_12 = arith.constant dense<0.000000e+00> : vector<64xf32>
    %21 = vector.multi_reduction <add>, %20, %cst_12 [1] : vector<64x64xf32> to vector<64xf32>
    %22 = vector.shape_cast %21 : vector<64xf32> to vector<64x1xf32>
    %23 = arith.addf %19, %22 : vector<64x1xf32>
    %cst_13 = arith.constant 7.812500e-03 : f32
    %24 = vector.broadcast %cst_13 : f32 to vector<64x1xf32>
    %25 = arith.mulf %23, %24 : vector<64x1xf32>
    %cst_14 = arith.constant 9.99999974E-6 : f32
    %26 = vector.broadcast %cst_14 : f32 to vector<64x1xf32>
    %27 = arith.addf %25, %26 : vector<64x1xf32>
    %28 = math.rsqrt %27 : vector<64x1xf32>
    %29 = vector.broadcast %28 : vector<64x1xf32> to vector<64x64xf32>
    %30 = arith.mulf %14, %29 : vector<64x64xf32>
    %31 = vector.broadcast %28 : vector<64x1xf32> to vector<64x64xf32>
    %32 = arith.mulf %16, %31 : vector<64x64xf32>
    %c0_15 = arith.constant 0 : index
    %c0_16 = arith.constant 0 : index
    %c0_17 = arith.constant 0 : index
    %33 = vector.load %arg4[%c0_15, %c0_16, %c0_17] : memref<2x64x64xf32, #tpu.memory_space<vmem>>, vector<1x64x64xf32>
    %34 = vector.shape_cast %33 : vector<1x64x64xf32> to vector<64x64xf32>
    %cst_18 = arith.constant dense<0.000000e+00> : vector<64x64xf32>
    %35 = tpu.matmul %30, %34, %cst_18 {dimension_numbers = #tpu.dot_dimension_numbers<[1], [0], [0], [1], [0, 0, 1, 1], [], []>} : vector<64x64xf32>, vector<64x64xf32>, vector<64x64xf32> -> vector<64x64xf32>
    %c1 = arith.constant 1 : index
    %c0_19 = arith.constant 0 : index
    %c0_20 = arith.constant 0 : index
    %36 = vector.load %arg4[%c1, %c0_19, %c0_20] : memref<2x64x64xf32, #tpu.memory_space<vmem>>, vector<1x64x64xf32>
    %37 = vector.shape_cast %36 : vector<1x64x64xf32> to vector<64x64xf32>
    %cst_21 = arith.constant dense<0.000000e+00> : vector<64x64xf32>
    %38 = tpu.matmul %32, %37, %cst_21 {dimension_numbers = #tpu.dot_dimension_numbers<[1], [0], [0], [1], [0, 0, 1, 1], [], []>} : vector<64x64xf32>, vector<64x64xf32>, vector<64x64xf32> -> vector<64x64xf32>
    %39 = arith.addf %35, %38 : vector<64x64xf32>
    %c0_22 = arith.constant 0 : index
    %c0_23 = arith.constant 0 : index
    %40 = vector.load %arg5[%c0_22, %c0_23] : memref<1x64xf32, #tpu.memory_space<vmem>>, vector<1x64xf32>
    %41 = vector.broadcast %40 : vector<1x64xf32> to vector<64x64xf32>
    %42 = arith.addf %39, %41 : vector<64x64xf32>
    %43 = vector.shape_cast %42 : vector<64x64xf32> to vector<8x8x64xf32>
    %c0_24 = arith.constant 0 : index
    %c0_25 = arith.constant 0 : index
    %c0_26 = arith.constant 0 : index
    %c0_27 = arith.constant 0 : index
    %44 = vector.load %arg6[%c0_24, %c0_25, %c0_26, %c0_27] : memref<1x8x8x64xf32, #tpu.memory_space<vmem>>, vector<1x8x8x64xf32>
    %45 = vector.shape_cast %44 : vector<1x8x8x64xf32> to vector<8x8x64xf32>
    %46 = vector.shape_cast %43 : vector<8x8x64xf32> to vector<1x8x8x64xf32>
    tpu.vector_store %arg6[%c0_24, %c0_25, %c0_26, %c0_27], %46 {strides = array<i32>} : memref<1x8x8x64xf32, #tpu.memory_space<vmem>>, vector<1x8x8x64xf32>,
    return
  }
  func.func @transform_0(%arg0: i32, %arg1: i32) -> (i32, i32, i32, i32, i32) {
    %c0_i32 = arith.constant 0 : i32
    %c0_i32_0 = arith.constant 0 : i32
    %c0_i32_1 = arith.constant 0 : i32
    %c0_i32_2 = arith.constant 0 : i32
    return %arg0, %arg1, %c0_i32, %c0_i32_0, %c0_i32_1 : i32, i32, i32, i32, i32
  }
  func.func @transform_1(%arg0: i32, %arg1: i32) -> (i32, i32, i32, i32, i32) {
    %c1_i32 = arith.constant 1 : i32
    %c0_i32 = arith.constant 0 : i32
    %c0_i32_0 = arith.constant 0 : i32
    %c0_i32_1 = arith.constant 0 : i32
    return %arg0, %arg1, %c1_i32, %c0_i32, %c0_i32_0 : i32, i32, i32, i32, i32
  }
  func.func @transform_2(%arg0: i32, %arg1: i32) -> (i32, i32, i32) {
    %c0_i32 = arith.constant 0 : i32
    %c0_i32_0 = arith.constant 0 : i32
    %c0_i32_1 = arith.constant 0 : i32
    %c0_i32_2 = arith.constant 0 : i32
    return %c0_i32, %c0_i32_0, %c0_i32_1 : i32, i32, i32
  }
  func.func @transform_3(%arg0: i32, %arg1: i32) -> (i32, i32) {
    %c0_i32 = arith.constant 0 : i32
    %c0_i32_0 = arith.constant 0 : i32
    %c0_i32_1 = arith.constant 0 : i32
    return %c0_i32, %c0_i32_0 : i32, i32
  }
  func.func @transform_4(%arg0: i32, %arg1: i32) -> (i32, i32, i32, i32) {
    %c0_i32 = arith.constant 0 : i32
    %c0_i32_0 = arith.constant 0 : i32
    %c0_i32_1 = arith.constant 0 : i32
    return %arg0, %arg1, %c0_i32, %c0_i32_0 : i32, i32, i32, i32
  }
}

</mosaic_0001>

<bundles_post_ra>
// kernel: patch_merging2d.1
= control target key start
LH: loop header
LB: loop body
LE: loop exit
PB: predicated region body
PF: predicated region fallthrough
CT: control target
= control target key end

     0   :  { %9 = vsyncpa [#allocation5], 0  ;;  %s1724_s0 = inlined_call_operand.vmem [shape: f32[2,8,2,8,64], index: 0, kind: input, shape index: {}, may-alias: {0,1}]   ;;  %s1725_s1 = inlined_call_operand.vmem [shape: f32[2,8,2,8,64], index: 1, kind: input, shape index: {}, may-alias: {0,1}]   ;;  %s1726_s2 = inlined_call_operand.vmem [shape: f32[2,64,64], index: 2, kind: input, shape index: {}]   ;;  %s1727_s3 = inlined_call_operand.vmem [shape: f32[1,64], index: 3, kind: input, shape index: {}]   ;;  %s1728_s4 = inlined_call_operand.hbm [shape: f32[2,8,8,64], index: 4, kind: output, shape index: {}]  }
   0x1   :  { %11 = vsyncpa [#allocation5 + $0x1], 0  ;;  %s1321_s15 = smov 0   ;;  %s1323_s16 = smov 0  }
   0x2   :  { %s1325_s17 = smov 0   ;;  %s1327_s18 = smov 0  }
   0x3   :  { %s1329_s19 = smov 0   ;;  %s1331_s20 = smov 0  }
   0x4 LB: > { %s999_s21 = sadd.s32 4294967295, %s1291_s20   ;;  %s1000_s22 = sadd.s32 4294967294, %s1291_s20   ;;  %s1291_s20 = sphi %s1331_s20, %s17_s20   ;;  %s1287_s19 = sphi %s1329_s19, %s1736_s19   ;;  %s1283_s18 = sphi %s1327_s18, %s1735_s18   ;;  %s1279_s17 = sphi %s1325_s17, %s1734_s17   ;;  %s1275_s16 = sphi %s1323_s16, %s1733_s16   ;;  %s1271_s15 = sphi %s1321_s15, %s1732_s15  }
   0x5   : > { %s29_s23 = sadd.s32 1, %s1287_s19  ;;  %s38_s24 = sadd.s32 1, %s1279_s17 }
   0x6   : > { %p31_p0 = scmp.ge.s32.totalorder %s29_s23, 2  ;;  %p45_p1 = scmp.ne.s32.totalorder %s1279_s17, %s1275_s16 }
   0x7   : > { %p46_p2 = scmp.eq.s32.totalorder %s1291_s20, 0  ;;  %p147_p3 = scmp.eq.s32.totalorder %s999_s21, 1 }
   0x8   : > { %s1738_s23 = smov (%p31_p0, %s29_s23), 0  ;;  %p152_p6 = scmp.ne.s32.totalorder %s1275_s16, %s1271_s15 }
   0x9   : > { %p1360_p4 = por %p46_p2, %p45_p1  ;;  %p1364_p5 = por %p147_p3, %p45_p1 }
   0xa   : > { %s33_s27 = ssub.s32 %s1287_s19, %s1738_s23  ;;  %p153_p8 = scmp.eq.s32.totalorder %s1000_s22, 1 }
   0xb   : > { %p36_p7 = scmp.eq.s32.totalorder %s33_s27, 0  ;;  %p1002_p10 = scmp.ge.s32.totalorder %s1291_s20, 2 }
   0xc   : > { %p1375_p9 = por %p153_p8, %p152_p6 }
   0xd   : > { %s1373_s28 = scalar_select %p36_p7, %s1279_s17, %s38_s24  }
   0xe   : > { %175 = sbr.rel (%p1002_p10) target bundleno = 35 (0x23), region = 24 }
  0x13   : > { %178 = sbr.rel (!%p1360_p4) target bundleno = 27 (0x1b), region = 28  ;;  %s180_s30 = sand.u32 (%p1360_p4), 1, %s1279_s17  }
  0x14   : > { %s1051_s5 = sshll.u32 (%p1360_p4), %s1287_s19, 7  ;;  %s1003_s6 = sshll.u32 (%p1360_p4), %s180_s30, 6 }
  0x15   : > { %s188_s9 = scalar_lea.vmem (%p1360_p4), %s1724_s0, %s1051_s5  ;;  %s182_s10 = scalar_lea.vmem (%p1360_p4), [#allocation2], %s1003_s6 }
  0x16   : > { %v231_v0 = vld [vmem:[%s188_s9] sm:$0xff] (%p1360_p4)  ;;  %v233_v1 = vld [vmem:[%s188_s9 + $0x10] sm:$0xff] (%p1360_p4) }
  0x17   : > { %v235_v2 = vld [vmem:[%s188_s9 + $0x20] sm:$0xff] (%p1360_p4)  ;;  %232 = vst [vmem:[%s182_s10] sm:$0xff] (%p1360_p4), %v231_v0  ;;  %234 = vst [vmem:[%s182_s10 + $0x8] sm:$0xff] (%p1360_p4), %v233_v1  ;;  %v237_v3 = vld [vmem:[%s188_s9 + $0x30] sm:$0xff] (%p1360_p4) }
  0x18   : > { %236 = vst [vmem:[%s182_s10 + $0x10] sm:$0xff] %v235_v2  ;;  %v239_v4 = vld [vmem:[%s188_s9 + $0x40] sm:$0xff]  ;;  %v241_v5 = vld [vmem:[%s188_s9 + $0x50] sm:$0xff]  ;;  %238 = vst [vmem:[%s182_s10 + $0x18] sm:$0xff] %v237_v3 }
  0x19   : > { %240 = vst [vmem:[%s182_s10 + $0x20] sm:$0xff] %v239_v4  ;;  %242 = vst [vmem:[%s182_s10 + $0x28] sm:$0xff] %v241_v5  ;;  %v243_v6 = vld [vmem:[%s188_s9 + $0x60] sm:$0xff]  ;;  %v245_v7 = vld [vmem:[%s188_s9 + $0x70] sm:$0xff] }
  0x1a   : > { %244 = vst [vmem:[%s182_s10 + $0x30] sm:$0xff] %v243_v6  ;;  %246 = vst [vmem:[%s182_s10 + $0x38] sm:$0xff] %v245_v7 }
  0x1b PF: > { %252 = sbr.rel (!%p1360_p4) target bundleno = 35 (0x23), region = 66  ;;  %s254_s11 = sand.u32 (%p1360_p4), 1, %s1279_s17  }
  0x1c   : > { %s1052_s12 = sshll.u32 (%p1360_p4), %s1287_s19, 7  ;;  %s1006_s13 = sshll.u32 (%p1360_p4), %s254_s11, 6 }
  0x1d   : > { %s932_s22 = scalar_lea.vmem (%p1360_p4), %s1725_s1, %s1052_s12  ;;  %s256_s24 = scalar_lea.vmem (%p1360_p4), [#allocation3], %s1006_s13 }
  0x1e   : > { %v1009_v8 = vld [vmem:[%s932_s22 + $0x8] sm:$0xff] (%p1360_p4)  ;;  %v1010_v9 = vld [vmem:[%s932_s22 + $0x18] sm:$0xff] (%p1360_p4) }
  0x1f   : > { %v1011_v10 = vld [vmem:[%s932_s22 + $0x28] sm:$0xff] (%p1360_p4)  ;;  %307 = vst [vmem:[%s256_s24] sm:$0xff] (%p1360_p4), %v1009_v8  ;;  %309 = vst [vmem:[%s256_s24 + $0x8] sm:$0xff] (%p1360_p4), %v1010_v9  ;;  %v1012_v11 = vld [vmem:[%s932_s22 + $0x38] sm:$0xff] (%p1360_p4) }
  0x20   : > { %311 = vst [vmem:[%s256_s24 + $0x10] sm:$0xff] %v1011_v10  ;;  %v1013_v12 = vld [vmem:[%s932_s22 + $0x48] sm:$0xff]  ;;  %v1014_v13 = vld [vmem:[%s932_s22 + $0x58] sm:$0xff]  ;;  %313 = vst [vmem:[%s256_s24 + $0x18] sm:$0xff] %v1012_v11 }
  0x21   : > { %315 = vst [vmem:[%s256_s24 + $0x20] sm:$0xff] %v1013_v12  ;;  %317 = vst [vmem:[%s256_s24 + $0x28] sm:$0xff] %v1014_v13  ;;  %v1015_v14 = vld [vmem:[%s932_s22 + $0x68] sm:$0xff]  ;;  %v1016_v15 = vld [vmem:[%s932_s22 + $0x78] sm:$0xff] }
  0x22   : > { %319 = vst [vmem:[%s256_s24 + $0x30] sm:$0xff] %v1015_v14  ;;  %321 = vst [vmem:[%s256_s24 + $0x38] sm:$0xff] %v1016_v15 }
  0x23 PF: > { %p1017_p11 = scmp.ge.s32.totalorder %s1291_s20, 1  ;;  %p326_p12 = scmp.lt.s32.totalorder %s1291_s20, 3 }
  0x25   : > { %p327_p13 = pnand %p1017_p11, %p326_p12 }
  0x26   : > { %s333_s25 = sand.u32 (!%p327_p13), 1, %s1275_s16   ;;  %s1053_s13 = sshll.u32 (!%p327_p13), %s1283_s18, 10 }
  0x27   : > { %330 = sbr.rel (%p327_p13) target bundleno = 599 (0x257), region = 104  ;;  %s1401_s27 = sshll.u32 (!%p327_p13), %s333_s25, 6 }
  0x28   : > { %s1404_s30 = scalar_lea.vmem (!%p327_p13), [#allocation2], %s1401_s27  ;;  %s1411_s5 = scalar_lea.vmem (!%p327_p13), [#allocation3], %s1401_s27 }
  0x29   : > { %s1649_s12 = scalar_lea.vmem (!%p327_p13), [#allocation4], %s1401_s27  ;;  %s1668_s22 = scalar_lea.hbm (!%p327_p13), %s1728_s4, %s1053_s13 }
  0x2a   : > { %s895_s27 = sshll.u32 (!%p327_p13), %s1649_s12, 4  ;;  %s1678_s18 = scalar_lea.sflag (!%p327_p13), [#allocation5], %s333_s25  ;;  %s1670_s27 = int_to_ptr.vmem [resolvable:$true] %s895_s27 }
  0x2b   : > { %s1215_s24 = scalar_lea.vmem (!%p327_p13), %s1670_s27, 1024 }
  0x2c   : > { %vm388_vm0 = vcmask 523264   ;;  %v373_v16 = vld [vmem:[%s1404_s30 + $0x8] sm:$0xff]  ;;  %v372_v17 = vld [vmem:[%s1404_s30] sm:$0xff]  ;;  %v1418_v24 = vld [vmem:[%s1411_s5 + $0x10] sm:$0xff]  ;;  %p1216_p0 = scmp.ne.s32.totalorder %s1670_s27, %s1215_s24 }
  0x2d   : > { %v392_v18 = vsel %vm388_vm0, %v373_v16, 0.0  ;;  %v389_v19 = vsel %vm388_vm0, %v372_v17, 0.0  ;;  %v381_v20 = vld [vmem:[%s1411_s5 + $0x8] sm:$0xff]  ;;  %v380_v21 = vld [vmem:[%s1411_s5] sm:$0xff]  ;;  %v374_v25 = vld [vmem:[%s1404_s30 + $0x10] sm:$0xff]  ;;  %v419_v26 = vsel %vm388_vm0, %v1418_v24, 0.0 }
  0x2e   : > { %393 = vadd.xlane.f32.xlu1 %v392_v18  ;;  %390 = vadd.xlane.f32.xlu0 %v389_v19  ;;  %v416_v22 = vsel %vm388_vm0, %v381_v20, 0.0  ;;  %v413_v23 = vsel %vm388_vm0, %v380_v21, 0.0  ;;  %v395_v27 = vsel %vm388_vm0, %v374_v25, 0.0  ;;  %v1425_v28 = vld [vmem:[%s1411_s5 + $0x18] sm:$0xff]  ;;  %v1435_v32 = vld [vmem:[%s1411_s5 + $0x20] sm:$0xff]  ;;  %v1445_v36 = vld [vmem:[%s1411_s5 + $0x28] sm:$0xff]  ;;  %p1217_p1 = pnand %p1216_p0, %p1364_p5 }
  0x2f   : > { %v1428_v29 = vld [vmem:[%s1404_s30 + $0x18] sm:$0xff]  ;;  %v422_v30 = vsel %vm388_vm0, %v1425_v28, 0.0  ;;  %v1438_v33 = vld [vmem:[%s1404_s30 + $0x20] sm:$0xff]  ;;  %v425_v34 = vsel %vm388_vm0, %v1435_v32, 0.0  ;;  %v1448_v37 = vld [vmem:[%s1404_s30 + $0x28] sm:$0xff]  ;;  %v428_v38 = vsel %vm388_vm0, %v1445_v36, 0.0 }
  0x30   : > { %v398_v31 = vsel %vm388_vm0, %v1428_v29, 0.0  ;;  %v401_v35 = vsel %vm388_vm0, %v1438_v33, 0.0  ;;  %v404_v39 = vsel %vm388_vm0, %v1448_v37, 0.0  ;;  %v1455_v40 = vld [vmem:[%s1411_s5 + $0x30] sm:$0xff]  ;;  %v1465_v44 = vld [vmem:[%s1411_s5 + $0x38] sm:$0xff]  ;;  %p1218_p2 = pneg %p1217_p1 }
  0x31   : > { %v1458_v41 = vld [vmem:[%s1404_s30 + $0x30] sm:$0xff]  ;;  %v431_v42 = vsel %vm388_vm0, %v1455_v40, 0.0  ;;  %v1468_v45 = vld [vmem:[%s1404_s30 + $0x38] sm:$0xff]  ;;  %v434_v46 = vsel %vm388_vm0, %v1465_v44, 0.0  ;;  %s1293_s30 = smov [#allocation4]  }
  0x32   : > { %417 = vadd.xlane.f32.xlu1 %v416_v22  ;;  %414 = vadd.xlane.f32.xlu0 %v413_v23  ;;  %v407_v43 = vsel %vm388_vm0, %v1458_v41, 0.0  ;;  %v410_v47 = vsel %vm388_vm0, %v1468_v45, 0.0  ;;  %s1219_s5 = sshll.u32 %s1293_s30, 4  ;;  %s1220_s5 = int_to_ptr.vmem [resolvable:$false] %s1219_s5 }
  0x33   : > { %s1221_s6 = scalar_lea.vmem %s1220_s5, 2048  ;;  %p1222_p3 = scmp.lt.s32.totalorder %s1670_s27, %s1220_s5 }
  0x34   : > { %p1223_p4 = scmp.lt.s32.totalorder %s1221_s6, %s1215_s24 }
  0x36   : > { %420 = vadd.xlane.f32.xlu1 %v419_v26  ;;  %396 = vadd.xlane.f32.xlu0 %v395_v27  ;;  %p1224_p6 = por %p1223_p4, %p1222_p3 }
  0x38   : > { %p1225_p7 = pnand %p1224_p6, %p1218_p2 }
  0x3a   : > { %423 = vadd.xlane.f32.xlu1 %v422_v30  ;;  %399 = vadd.xlane.f32.xlu0 %v398_v31 }
  0x3e   : > { %426 = vadd.xlane.f32.xlu1 %v425_v34  ;;  %402 = vadd.xlane.f32.xlu0 %v401_v35 }
  0x42   : > { %429 = vadd.xlane.f32.xlu1 %v428_v38  ;;  %405 = vadd.xlane.f32.xlu0 %v404_v39 }
  0x46   : > { %432 = vadd.xlane.f32.xlu1 %v431_v42  ;;  %408 = vadd.xlane.f32.xlu0 %v407_v43 }
  0x4a   : > { %435 = vadd.xlane.f32.xlu1 %v434_v46  ;;  %411 = vadd.xlane.f32.xlu0 %v410_v47 }
  0xb7   : > { %v394_v48 = vpop.xlane.xlu1 %393  ;;  %v391_v49 = vpop.xlane.xlu0 %390 }
  0xbb   : > { %v418_v50 = vpop.xlane.xlu1 %417  ;;  %v415_v51 = vpop.xlane.xlu0 %414 }
  0xbc   : > { %v438_v52 = vadd.f32 %v418_v50, %v394_v48  ;;  %v437_v53 = vadd.f32 %v415_v51, %v391_v49 }
  0xbe   : > { %v446_v54 = vmul.f32 0.0078125, %v438_v52  ;;  %v445_v55 = vmul.f32 0.0078125, %v437_v53 }
  0xbf   : > { %v421_v56 = vpop.xlane.xlu1 %420  ;;  %v397_v57 = vpop.xlane.xlu0 %396 }
  0xc0   : > { %v1474_v58 = vsub.f32 %v373_v16, %v446_v54  ;;  %v1476_v59 = vsub.f32 %v381_v20, %v446_v54  ;;  %v1478_v60 = vsub.f32 %v372_v17, %v445_v55  ;;  %v1480_v61 = vsub.f32 %v380_v21, %v445_v55 }
  0xc1   : > { %v439_v62 = vadd.f32 %v421_v56, %v397_v57 }
  0xc2   : > { %v501_v63 = vmul.f32 %v1480_v61, %v1480_v61  ;;  %v469_v0 = vmul.f32 %v1478_v60, %v1478_v60  ;;  %v502_v4 = vmul.f32 %v1476_v59, %v1476_v59  ;;  %v470_v8 = vmul.f32 %v1474_v58, %v1474_v58 }
  0xc3   : > { %v447_v1 = vmul.f32 0.0078125, %v439_v62  ;;  %v424_v2 = vpop.xlane.xlu1 %423  ;;  %v400_v3 = vpop.xlane.xlu0 %399 }
  0xc4   : > { %v509_v5 = vsel %vm388_vm0, %v501_v63, 0.0  ;;  %v477_v6 = vsel %vm388_vm0, %v469_v0, 0.0  ;;  %v440_v7 = vadd.f32 %v424_v2, %v400_v3  ;;  %v512_v12 = vsel %vm388_vm0, %v502_v4, 0.0  ;;  %v1028_v0 = vld [vmem:[%s1726_s2 + $0x78] sm:$0xff]  ;;  %v1027_v4 = vld [vmem:[%s1726_s2 + $0x70] sm:$0xff] }
  0xc5   : > { %v1492_v9 = vsub.f32 %v374_v25, %v447_v1  ;;  %v1495_v10 = vsub.f32 %v1418_v24, %v447_v1  ;;  %510 = vadd.xlane.f32.xlu1 %v509_v5  ;;  %478 = vadd.xlane.f32.xlu0 %v477_v6  ;;  %v480_v19 = vsel %vm388_vm0, %v470_v8, 0.0  ;;  %v588_v1 = vld [vmem:[%s1726_s2 + $0x38] sm:$0xff]  ;;  %v587_v5 = vld [vmem:[%s1726_s2 + $0x30] sm:$0xff]  ;;  %v1026_v6 = vld [vmem:[%s1726_s2 + $0x68] sm:$0xff] }
  0xc6   : > { %v448_v11 = vmul.f32 0.0078125, %v440_v7  ;;  %1086 = vmatprep.subr.mxu0 %v1028_v0  ;;  %1114 = vmatprep.subr.mxu1 %v588_v1  ;;  %v586_v7 = vld [vmem:[%s1726_s2 + $0x28] sm:$0xff] }
  0xc7   : > { %v427_v13 = vpop.xlane.xlu1 %426  ;;  %v403_v14 = vpop.xlane.xlu0 %402  ;;  %v503_v15 = vmul.f32 %v1495_v10, %v1495_v10  ;;  %v471_v16 = vmul.f32 %v1492_v9, %v1492_v9  ;;  %1087 = vmatpush3.msra.mxu0 %v1028_v0  ;;  %1115 = vmatpush3.msra.mxu1 %v588_v1 }
  0xc8   : > { %v1503_v17 = vsub.f32 %v1428_v29, %v448_v11  ;;  %v1506_v18 = vsub.f32 %v1425_v28, %v448_v11  ;;  %v441_v20 = vadd.f32 %v427_v13, %v403_v14  ;;  %1088 = vmatprep.subr.mxu0 %v1027_v4  ;;  %1116 = vmatprep.subr.mxu1 %v587_v5  ;;  %v585_v13 = vld [vmem:[%s1726_s2 + $0x20] sm:$0xff]  ;;  %v1024_v14 = vld [vmem:[%s1726_s2 + $0x58] sm:$0xff] }
  0xc9   : > { %513 = vadd.xlane.f32.xlu1 %v512_v12  ;;  %481 = vadd.xlane.f32.xlu0 %v480_v19  ;;  %v515_v21 = vsel %vm388_vm0, %v503_v15, 0.0  ;;  %v483_v23 = vsel %vm388_vm0, %v471_v16, 0.0  ;;  %v1025_v12 = vld [vmem:[%s1726_s2 + $0x60] sm:$0xff]  ;;  %v584_v15 = vld [vmem:[%s1726_s2 + $0x18] sm:$0xff]  ;;  %v1023_v16 = vld [vmem:[%s1726_s2 + $0x50] sm:$0xff] }
  0xca   : > { %v449_v22 = vmul.f32 0.0078125, %v441_v20  ;;  %v504_v24 = vmul.f32 %v1506_v18, %v1506_v18  ;;  %v472_v25 = vmul.f32 %v1503_v17, %v1503_v17  ;;  %1089 = vmatpush3.msra.mxu0 %v1027_v4  ;;  %1117 = vmatpush3.msra.mxu1 %v587_v5  ;;  %v583_v19 = vld [vmem:[%s1726_s2 + $0x10] sm:$0xff]  ;;  %v1022_v20 = vld [vmem:[%s1726_s2 + $0x48] sm:$0xff] }
  0xcb   : > { %v430_v26 = vpop.xlane.xlu1 %429  ;;  %v406_v27 = vpop.xlane.xlu0 %405  ;;  %1090 = vmatprep.subr.mxu0 %v1026_v6  ;;  %1118 = vmatprep.subr.mxu1 %v586_v7 }
  0xcc   : > { %v1516_v28 = vsub.f32 %v1438_v33, %v449_v22  ;;  %v1519_v29 = vsub.f32 %v1435_v32, %v449_v22  ;;  %v442_v30 = vadd.f32 %v430_v26, %v406_v27  ;;  %v518_v31 = vsel %vm388_vm0, %v504_v24, 0.0  ;;  %1091 = vmatpush3.msra.mxu0 %v1026_v6  ;;  %1119 = vmatpush3.msra.mxu1 %v586_v7  ;;  %v1021_v22 = vld [vmem:[%s1726_s2 + $0x40] sm:$0xff] }
  0xcd   : > { %516 = vadd.xlane.f32.xlu1 %v515_v21  ;;  %484 = vadd.xlane.f32.xlu0 %v483_v23  ;;  %v486_v35 = vsel %vm388_vm0, %v472_v25, 0.0  ;;  %v582_v21 = vld [vmem:[%s1726_s2 + $0x8] sm:$0xff]  ;;  %v581_v23 = vld [vmem:[%s1726_s2] sm:$0xff] }
  0xce   : > { %v450_v34 = vmul.f32 0.0078125, %v442_v30  ;;  %v505_v38 = vmul.f32 %v1519_v29, %v1519_v29  ;;  %v473_v39 = vmul.f32 %v1516_v28, %v1516_v28  ;;  %1092 = vmatprep.subr.mxu0 %v1025_v12  ;;  %1120 = vmatprep.subr.mxu1 %v585_v13 }
  0xcf   : > { %v433_v42 = vpop.xlane.xlu1 %432  ;;  %v409_v33 = vpop.xlane.xlu0 %408  ;;  %1093 = vmatpush3.msra.mxu0 %v1025_v12  ;;  %1121 = vmatpush3.msra.mxu1 %v585_v13 }
  0xd0   : > { %v1528_v43 = vsub.f32 %v1448_v37, %v450_v34  ;;  %v1531_v32 = vsub.f32 %v1445_v36, %v450_v34  ;;  %v443_v46 = vadd.f32 %v433_v42, %v409_v33  ;;  %v521_v47 = vsel %vm388_vm0, %v505_v38, 0.0  ;;  %1094 = vmatprep.subr.mxu0 %v1024_v14  ;;  %1122 = vmatprep.subr.mxu1 %v584_v15 }
  0xd1   : > { %519 = vadd.xlane.f32.xlu1 %v518_v31  ;;  %487 = vadd.xlane.f32.xlu0 %v486_v35  ;;  %v489_v49 = vsel %vm388_vm0, %v473_v39, 0.0 }
  0xd2   : > { %v451_v48 = vmul.f32 0.0078125, %v443_v46  ;;  %v506_v50 = vmul.f32 %v1531_v32, %v1531_v32  ;;  %v474_v51 = vmul.f32 %v1528_v43, %v1528_v43  ;;  %1095 = vmatpush3.msra.mxu0 %v1024_v14  ;;  %1123 = vmatpush3.msra.mxu1 %v584_v15 }
  0xd3   : > { %v436_v52 = vpop.xlane.xlu1 %435  ;;  %v412_v37 = vpop.xlane.xlu0 %411  ;;  %1096 = vmatprep.subr.mxu0 %v1023_v16  ;;  %1124 = vmatprep.subr.mxu1 %v583_v19 }
  0xd4   : > { %v1540_v53 = vsub.f32 %v1458_v41, %v451_v48  ;;  %v1543_v36 = vsub.f32 %v1455_v40, %v451_v48  ;;  %v444_v54 = vadd.f32 %v436_v52, %v412_v37  ;;  %v524_v55 = vsel %vm388_vm0, %v506_v50, 0.0  ;;  %1097 = vmatpush3.msra.mxu0 %v1023_v16  ;;  %1125 = vmatpush3.msra.mxu1 %v583_v19 }
  0xd5   : > { %522 = vadd.xlane.f32.xlu1 %v521_v47  ;;  %490 = vadd.xlane.f32.xlu0 %v489_v49  ;;  %v492_v57 = vsel %vm388_vm0, %v474_v51, 0.0 }
  0xd6   : > { %v452_v56 = vmul.f32 0.0078125, %v444_v54  ;;  %v507_v62 = vmul.f32 %v1543_v36, %v1543_v36  ;;  %v475_v63 = vmul.f32 %v1540_v53, %v1540_v53  ;;  %1098 = vmatprep.subr.mxu0 %v1022_v20  ;;  %1126 = vmatprep.subr.mxu1 %v582_v21 }
  0xd7   : > { %1099 = vmatpush3.msra.mxu0 %v1022_v20  ;;  %1127 = vmatpush3.msra.mxu1 %v582_v21 }
  0xd8   : > { %v1552_v41 = vsub.f32 %v1468_v45, %v452_v56  ;;  %v1555_v40 = vsub.f32 %v1465_v44, %v452_v56  ;;  %v527_v2 = vsel %vm388_vm0, %v507_v62, 0.0  ;;  %v495_v3 = vsel %vm388_vm0, %v475_v63, 0.0  ;;  %1100 = vmatprep.subr.mxu0 %v1021_v22  ;;  %1128 = vmatprep.subr.mxu1 %v581_v23 }
  0xd9   : > { %525 = vadd.xlane.f32.xlu1 %v524_v55  ;;  %493 = vadd.xlane.f32.xlu0 %v492_v57 }
  0xda   : > { %v508_v45 = vmul.f32 %v1555_v40, %v1555_v40  ;;  %v476_v44 = vmul.f32 %v1552_v41, %v1552_v41  ;;  %1101 = vmatpush3.msra.mxu0 %v1021_v22  ;;  %1129 = vmatpush3.msra.mxu1 %v581_v23 }
  0xdc   : > { %v530_v8 = vsel %vm388_vm0, %v508_v45, 0.0  ;;  %v498_v11 = vsel %vm388_vm0, %v476_v44, 0.0 }
  0xdd   : > { %528 = vadd.xlane.f32.xlu1 %v527_v2  ;;  %496 = vadd.xlane.f32.xlu0 %v495_v3 }
  0xe1   : > { %531 = vadd.xlane.f32.xlu1 %v530_v8  ;;  %499 = vadd.xlane.f32.xlu0 %v498_v11 }
 0x14e   : > { %v511_v24 = vpop.xlane.xlu1 %510  ;;  %v479_v25 = vpop.xlane.xlu0 %478 }
 0x14f   : > { %v533_v26 = vadd.f32 %v511_v24, %v479_v25 }
 0x151   : > { %v541_v27 = vmul.f32 0.0078125, %v533_v26 }
 0x152   : > { %v514_v30 = vpop.xlane.xlu1 %513  ;;  %v482_v31 = vpop.xlane.xlu0 %481 }
 0x153   : > { %v549_v34 = vadd.f32 1e-05, %v541_v27  ;;  %v534_v35 = vadd.f32 %v514_v30, %v482_v31 }
 0x155   : > { %1199 = vrsqrt.f32 %v549_v34  ;;  %v542_v38 = vmul.f32 0.0078125, %v534_v35 }
 0x156   : > { %v517_v39 = vpop.xlane.xlu1 %516  ;;  %v485_v42 = vpop.xlane.xlu0 %484 }
 0x157   : > { %v550_v33 = vadd.f32 1e-05, %v542_v38  ;;  %v535_v46 = vadd.f32 %v517_v39, %v485_v42 }
 0x159   : > { %1201 = vrsqrt.f32 %v550_v33  ;;  %v543_v47 = vmul.f32 0.0078125, %v535_v46 }
 0x15a   : > { %v520_v48 = vpop.xlane.xlu1 %519  ;;  %v488_v49 = vpop.xlane.xlu0 %487 }
 0x15b   : > { %v551_v50 = vadd.f32 1e-05, %v543_v47  ;;  %v536_v51 = vadd.f32 %v520_v48, %v488_v49 }
 0x15d   : > { %1203 = vrsqrt.f32 %v551_v50  ;;  %v544_v52 = vmul.f32 0.0078125, %v536_v51 }
 0x15e   : > { %v523_v37 = vpop.xlane.xlu1 %522  ;;  %v491_v54 = vpop.xlane.xlu0 %490 }
 0x15f   : > { %v552_v55 = vadd.f32 1e-05, %v544_v52  ;;  %v537_v56 = vadd.f32 %v523_v37, %v491_v54 }
 0x161   : > { %1205 = vrsqrt.f32 %v552_v55  ;;  %v545_v57 = vmul.f32 0.0078125, %v537_v56 }
 0x162   : > { %v1200_v62 = vpop.eup %1199  ;;  %v526_v63 = vpop.xlane.xlu1 %525 }
 0x163   : > { %v494_v0 = vpop.xlane.xlu0 %493  ;;  %v553_v1 = vadd.f32 1e-05, %v545_v57  ;;  %v573_v3 = vmul.f32 %v1200_v62, %v1480_v61  ;;  %v565_v45 = vmul.f32 %v1200_v62, %v1478_v60 }
 0x164   : > { %v538_v2 = vadd.f32 %v526_v63, %v494_v0 }
 0x165   : > { %1207 = vrsqrt.f32 %v553_v1  ;;  %1102 = vmatprep.mubr.msk.f32.mxu0 %vm388_vm0, %v573_v3  ;;  %1130 = vmatprep.mubr.msk.f32.mxu1 %vm388_vm0, %v565_v45 }
 0x166   : > { %v546_v44 = vmul.f32 0.0078125, %v538_v2  ;;  %v1202_v4 = vpop.eup %1201  ;;  %v529_v5 = vpop.xlane.xlu1 %528 }
 0x167   : > { %v497_v6 = vpop.xlane.xlu0 %496  ;;  %v574_v11 = vmul.f32 %v1202_v4, %v1476_v59  ;;  %v566_v12 = vmul.f32 %v1202_v4, %v1474_v58 }
 0x168   : > { %v554_v7 = vadd.f32 1e-05, %v546_v44  ;;  %v539_v8 = vadd.f32 %v529_v5, %v497_v6 }
 0x169   : > { %1103 = vmatmul.mubr.msk.f32.vlgmr.msra.gmra.mxu0 %vm388_vm0, %v574_v11  ;;  %1131 = vmatmul.mubr.msk.f32.vlgmr.msra.gmra.mxu1 %vm388_vm0, %v566_v12 }
 0x16a   : > { %1209 = vrsqrt.f32 %v554_v7  ;;  %v547_v13 = vmul.f32 0.0078125, %v539_v8  ;;  %v1204_v60 = vpop.eup %1203  ;;  %v532_v61 = vpop.xlane.xlu1 %531 }
 0x16b   : > { %v500_v14 = vpop.xlane.xlu0 %499  ;;  %v575_v19 = vmul.f32 %v1204_v60, %v1495_v10  ;;  %v567_v20 = vmul.f32 %v1204_v60, %v1492_v9 }
 0x16c   : > { %v555_v15 = vadd.f32 1e-05, %v547_v13  ;;  %v540_v16 = vadd.f32 %v532_v61, %v500_v14 }
 0x16d   : > { %1105 = vmatprep.mubr.msk.f32.mxu0 %vm388_vm0, %v575_v19  ;;  %1133 = vmatprep.mubr.msk.f32.mxu1 %vm388_vm0, %v567_v20 }
 0x16e   : > { %1211 = vrsqrt.f32 %v555_v15  ;;  %v548_v21 = vmul.f32 0.0078125, %v540_v16  ;;  %v1206_v58 = vpop.eup %1205 }
 0x16f   : > { %v576_v22 = vmul.f32 %v1206_v58, %v1506_v18  ;;  %v568_v23 = vmul.f32 %v1206_v58, %v1503_v17 }
 0x170   : > { %v556_v59 = vadd.f32 1e-05, %v548_v21 }
 0x171   : > { %1106 = vmatmul.mubr.msk.f32.gmra.mxu0 %vm388_vm0, %v576_v22  ;;  %1134 = vmatmul.mubr.msk.f32.gmra.mxu1 %vm388_vm0, %v568_v23 }
 0x172   : > { %1213 = vrsqrt.f32 %v556_v59  ;;  %v1208_v10 = vpop.eup %1207 }
 0x173   : > { %v577_v9 = vmul.f32 %v1208_v10, %v1519_v29  ;;  %v569_v24 = vmul.f32 %v1208_v10, %v1516_v28 }
 0x175   : > { %1108 = vmatprep.mubr.msk.f32.mxu0 %vm388_vm0, %v577_v9  ;;  %1136 = vmatprep.mubr.msk.f32.mxu1 %vm388_vm0, %v569_v24 }
 0x177   : > { %v1210_v25 = vpop.eup %1209 }
 0x178   : > { %v578_v26 = vmul.f32 %v1210_v25, %v1531_v32  ;;  %v570_v18 = vmul.f32 %v1210_v25, %v1528_v43 }
 0x17a   : > { %1109 = vmatmul.mubr.msk.f32.gmra.mxu0 %vm388_vm0, %v578_v26  ;;  %1137 = vmatmul.mubr.msk.f32.gmra.mxu1 %vm388_vm0, %v570_v18 }
 0x17b   : > { %v1212_v17 = vpop.eup %1211 }
 0x17c   : > { %v579_v27 = vmul.f32 %v1212_v17, %v1543_v36  ;;  %v571_v29 = vmul.f32 %v1212_v17, %v1540_v53  ;;  %v1045_v53 = vld [vmem:[%s1727_s3] ss:$0 sm:$0xff] }
 0x17e   : > { %1111 = vmatprep.mubr.msk.f32.mxu0 %vm388_vm0, %v579_v27  ;;  %1139 = vmatprep.mubr.msk.f32.mxu1 %vm388_vm0, %v571_v29 }
 0x17f   : > { %v1214_v28 = vpop.eup %1213 }
 0x180   : > { %v580_v30 = vmul.f32 %v1214_v28, %v1555_v40  ;;  %v572_v32 = vmul.f32 %v1214_v28, %v1552_v41 }
 0x182   : > { %1112 = vmatmul.mubr.msk.f32.gmra.mxu0 %vm388_vm0, %v580_v30  ;;  %1140 = vmatmul.mubr.msk.f32.gmra.mxu1 %vm388_vm0, %v572_v32 }
 0x229   : > { %v1104_v43 = vpop.f32.mrf.mxu0  ;;  %v1132_v31 = vpop.f32.mrf.mxu1 }
 0x22a   : > { %v823_v36 = vadd.f32 %v1132_v31, %v1104_v43 }
 0x22b   : > { %v688_v34 = vpop.f32.mrf.mxu0  ;;  %v817_v35 = vpop.f32.mrf.mxu1 }
 0x22c   : > { %v864_v38 = vadd.f32 %v1045_v53, %v823_v36  ;;  %v818_v39 = vadd.f32 %v817_v35, %v688_v34 }
 0x22e   : > { %872 = vst.msk [vmem:[%s1649_s12 + $0x8] sm:$0xff] %vm388_vm0, %v864_v38  ;;  %v863_v41 = vadd.f32 %v1045_v53, %v818_v39 }
 0x230   : > { %871 = vst.msk [vmem:[%s1649_s12] sm:$0xff] %vm388_vm0, %v863_v41 }
 0x231   : > { %v1107_v40 = vpop.f32.mrf.mxu0  ;;  %v1135_v42 = vpop.f32.mrf.mxu1 }
 0x232   : > { %v833_v33 = vadd.f32 %v1135_v42, %v1107_v40 }
 0x233   : > { %v698_v46 = vpop.f32.mrf.mxu0  ;;  %v827_v47 = vpop.f32.mrf.mxu1 }
 0x234   : > { %v866_v48 = vadd.f32 %v1045_v53, %v833_v33  ;;  %v828_v49 = vadd.f32 %v827_v47, %v698_v46 }
 0x236   : > { %874 = vst.msk [vmem:[%s1649_s12 + $0x18] sm:$0xff] %vm388_vm0, %v866_v48  ;;  %v865_v50 = vadd.f32 %v1045_v53, %v828_v49 }
 0x238   : > { %873 = vst.msk [vmem:[%s1649_s12 + $0x10] sm:$0xff] %vm388_vm0, %v865_v50 }
 0x23a   : > { %v1110_v51 = vpop.f32.mrf.mxu0  ;;  %v1138_v52 = vpop.f32.mrf.mxu1 }
 0x23b   : > { %v843_v37 = vadd.f32 %v1138_v52, %v1110_v51 }
 0x23c   : > { %v708_v54 = vpop.f32.mrf.mxu0  ;;  %v837_v55 = vpop.f32.mrf.mxu1 }
 0x23d   : > { %v868_v56 = vadd.f32 %v1045_v53, %v843_v37  ;;  %v838_v57 = vadd.f32 %v837_v55, %v708_v54 }
 0x23f   : > { %876 = vst.msk [vmem:[%s1649_s12 + $0x28] sm:$0xff] %vm388_vm0, %v868_v56  ;;  %v867_v62 = vadd.f32 %v1045_v53, %v838_v57 }
 0x241   : > { %875 = vst.msk [vmem:[%s1649_s12 + $0x20] sm:$0xff] %vm388_vm0, %v867_v62 }
 0x242   : > { %v1113_v63 = vpop.f32.mrf.mxu0  ;;  %v1141_v0 = vpop.f32.mrf.mxu1 }
 0x243   : > { %v853_v1 = vadd.f32 %v1141_v0, %v1113_v63 }
 0x244   : > { %v718_v2 = vpop.f32.mrf.mxu0  ;;  %v847_v3 = vpop.f32.mrf.mxu1 }
 0x245   : > { %v870_v45 = vadd.f32 %v1045_v53, %v853_v1  ;;  %v848_v44 = vadd.f32 %v847_v3, %v718_v2 }
 0x247   : > { %878 = vst.msk [vmem:[%s1649_s12 + $0x38] sm:$0xff] %vm388_vm0, %v870_v45  ;;  %v869_v4 = vadd.f32 %v1045_v53, %v848_v44 }
 0x249   : > { %877 = vst.msk [vmem:[%s1649_s12 + $0x30] sm:$0xff] %vm388_vm0, %v869_v4 }
 0x24a   : > { %1228 = shalt.err (!%p1225_p7)
}
 0x24b   : > { %s1229_s25 = scalar_lea.hbm %s1668_s22, 1024  ;;  %s1233_s9 = scalar_lea.hbm %s1728_s4, 2048 }
 0x24c   : > { %p1230_p8 = scmp.ne.s32.totalorder %s1668_s22, %s1229_s25  ;;  %p1234_p13 = scmp.lt.s32.totalorder %s1668_s22, %s1728_s4 }
 0x24d   : > { %p1235_p0 = scmp.lt.s32.totalorder %s1233_s9, %s1229_s25 }
 0x24e   : > { %p1231_p11 = pnand %p1230_p8, %p1364_p5 }
 0x24f   : > { %p1236_p1 = por %p1235_p0, %p1234_p13 }
 0x250   : > { %p1232_p12 = pneg %p1231_p11 }
 0x252   : > { %p1237_p2 = pnand %p1236_p1, %p1232_p12 }
 0x254   : > { %1240 = shalt.err (!%p1237_p2)
}
 0x255   : > { %s1294_s12 = smov 128   ;;  %s1295_s13 = smov 8  }
 0x256   : > { %1142 = dma.vmem_to_hbm [thread:$0]  (%p1364_p5), %s1670_s27, 1024, %s1668_s22, %s1678_s18, %s1294_s12, %s1294_s12, %s1295_s13  }
 0x257 PF: > { %s910_s14 = sand.u32 1, %s1271_s15   ;;  %p1145_p3 = pnand %p1002_p10, %p1375_p9 }
 0x258   : > { %s911_s21 = scalar_lea.sflag [#allocation5], %s910_s14 }
 0x259   : > { %p1146_p4 = pneg %p1145_p3 }
 0x25b   : > { %1266 = dma.done.wait (%p1146_p4), %s911_s21, 1024  }
 0x25c   : > { %1268 = vsyncadd (%p1146_p4), %s911_s21, 4294966272  ;;  %s17_s20 = sadd.s32 1, %s1291_s20   ;;  %s1732_s15 = smov %s1275_s16 }
 0x25d   : > { %p14_p6 = scmp.ge.s32.totalorder %s17_s20, 4   ;;  %s1733_s16 = smov %s1279_s17 }
 0x25e   : > { %s1734_s17 = smov %s1373_s28  ;;  %s1735_s18 = smov %s1287_s19 }
 0x25f   : > { %s1736_s19 = smov %s1738_s23  ;;  %16 = sbr.rel (!%p14_p6) target bundleno = 4 (0x4), region = 161 }
 0x264   :  { %916 = vsyncpa [#allocation5], 1 }
 0x265   :  { %918 = vsyncpa [#allocation5 + $0x1], 1 }

</bundles_post_ra>
